<compile_context>
chip_gen: v6e
topology: v6e:2x2x1
jax: 0.10.0
libtpu: 0.0.40
codegen_flags: <defaults>
</compile_context>

<pallas_src>
import jax
import jax.numpy as jnp
from jax.experimental import pallas as pl
from jax.experimental.pallas import tpu as pltpu


def filter_norm_kernel(x_ref, std_ref, mean_ref, o_ref):
    # x_ref:    (C, K2, TB)  -- lane axis = batch tile (lane-dense)
    # std_ref:  (C, K2, 1)   -- resident running-std parameter
    # mean_ref: (C, K2, 1)   -- resident running-mean parameter
    # o_ref:    (C, K2, TB)
    x = x_ref[...].astype(jnp.float32)
    n = x.shape[1]

    std_b = std_ref[...].astype(jnp.float32)    # (C, K2, 1)
    mean_b = mean_ref[...].astype(jnp.float32)  # (C, K2, 1)

    mu = jnp.mean(x, axis=1, keepdims=True)     # (C, 1, TB)
    xc = x - mu
    # torch.Tensor.std() is unbiased (divides by N-1)
    var = jnp.sum(xc * xc, axis=1, keepdims=True) / jnp.float32(n - 1)
    sd = jnp.sqrt(var)
    inv = pl.reciprocal(sd + jnp.float32(1e-10), approx=False)  # (C, 1, TB)

    # Fused normalize + affine: xc * (std * 1/(sd+eps)) + mean
    o_ref[...] = (xc * (std_b * inv) + mean_b).astype(o_ref.dtype)


def filter_norm(x, std_param, mean_param, in_channels, kernel_size, tb=8192):
    """x: (B, C, k, k) float32.  Returns (B, C*k*k)."""
    b = x.shape[0]
    c = in_channels
    k2 = kernel_size * kernel_size

    # Layout plumbing in the wrapper: (B, C, K2) -> (C, K2, B)
    xt = jnp.transpose(x.reshape(b, c, k2), (1, 2, 0))
    std3 = std_param.reshape(c, k2, 1)
    mean3 = mean_param.reshape(c, k2, 1)

    # Batch tile: full extent if it fits in one step, otherwise a multiple of
    # 128 so the tiled lane dimension stays aligned (last, padded block is
    # harmless: the per-column reduction never mixes batch columns).
    if b <= tb:
        tb = b
    grid = (pl.cdiv(b, tb),)

    out_t = pl.pallas_call(
        filter_norm_kernel,
        out_shape=jax.ShapeDtypeStruct((c, k2, b), x.dtype),
        grid=grid,
        in_specs=[
            pl.BlockSpec((c, k2, tb), lambda i: (0, 0, i)),
            pl.BlockSpec((c, k2, 1), lambda i: (0, 0, 0)),
            pl.BlockSpec((c, k2, 1), lambda i: (0, 0, 0)),
        ],
        out_specs=pl.BlockSpec((c, k2, tb), lambda i: (0, 0, i)),
        compiler_params=pltpu.CompilerParams(dimension_semantics=("parallel",)),
    )(xt, std3, mean3)

    # (C, K2, B) -> (B, C, K2) -> (B, C*K2)
    return jnp.transpose(out_t, (2, 0, 1)).reshape(b, c * k2)


def filter_norm_ref(x, std_param, mean_param, in_channels, kernel_size):
    """Pure-JAX reference mirroring the PyTorch forward."""
    b = x.shape[0]
    c = in_channels
    xf = x.reshape(b, c, -1)
    mu = jnp.mean(xf, axis=2, keepdims=True)
    xc = xf - mu
    sd = jnp.sqrt(jnp.sum(xc * xc, axis=2, keepdims=True) / (xf.shape[-1] - 1))
    y = xc / (sd + 1e-10)
    y = y.reshape(b, -1)
    y = y * std_param[None, :]
    y = y + mean_param[None, :]
    return y


if __name__ == "__main__":
    # Module config: in_channels=4, kernel_size=3, nonlinearity='linear',
    # running_std=True, running_mean=True.
    in_channels = 4
    kernel_size = 3
    k2 = kernel_size * kernel_size

    key = jax.random.PRNGKey(0)
    kx, kstd, kmean, kx2 = jax.random.split(key, 4)

    # calculate_gain('linear') == 1.0
    std_scale = 1.0 / kernel_size
    std_param = jax.random.normal(kstd, (in_channels * k2,), jnp.float32) * std_scale
    mean_param = jax.random.normal(kmean, (in_channels * k2,), jnp.float32)

    # Test 1: small batch, single grid step (block = full extent).
    batch = 2
    x = jax.random.normal(kx, (batch, in_channels, kernel_size, kernel_size),
                          jnp.float32)
    out = filter_norm(x, std_param, mean_param, in_channels, kernel_size)
    out = jax.block_until_ready(out)
    ref = filter_norm_ref(x, std_param, mean_param, in_channels, kernel_size)
    assert out.shape == (batch, in_channels * k2)
    assert jnp.allclose(out, ref, atol=1e-5, rtol=1e-5)

    # Test 2: exercise the batch-tiled grid path (grid > 1, padded last block).
    batch2 = 300
    x2 = jax.random.normal(kx2, (batch2, in_channels, kernel_size, kernel_size),
                           jnp.float32)
    out2 = filter_norm(x2, std_param, mean_param, in_channels, kernel_size, tb=128)
    out2 = jax.block_until_ready(out2)
    ref2 = filter_norm_ref(x2, std_param, mean_param, in_channels, kernel_size)
    assert out2.shape == (batch2, in_channels * k2)
    assert jnp.allclose(out2, ref2, atol=1e-5, rtol=1e-5)

    print("KERNEL_OK")
</pallas_src>

<mosaic_0001>
module attributes {stable_mosaic.version = 11 : i64} {
  func.func @filter_norm_kernel(%arg0: i32, %arg1: memref<4x9x2xf32, #tpu.memory_space<vmem>>, %arg2: memref<4x9x1xf32, #tpu.memory_space<vmem>>, %arg3: memref<4x9x1xf32, #tpu.memory_space<vmem>>, %arg4: memref<4x9x2xf32, #tpu.memory_space<vmem>>) attributes {dimension_semantics = [#tpu.dimension_semantics<parallel>], iteration_bounds = array<i64: 1>, scalar_prefetch = 0 : i64, scratch_operands = 0 : i64, tpu.core_type = #tpu.core_type<tc>, window_params = [{transform_indices = @transform_0, window_bounds = array<i64: 4, 9, 2>}, {pipeline_mode = #tpu.pipeline_mode<synchronous>, transform_indices = @transform_1, window_bounds = array<i64: 4, 9, 1>}, {pipeline_mode = #tpu.pipeline_mode<synchronous>, transform_indices = @transform_2, window_bounds = array<i64: 4, 9, 1>}, {transform_indices = @transform_3, window_bounds = array<i64: 4, 9, 2>}]} {
    %c0 = arith.constant 0 : index
    %c0_0 = arith.constant 0 : index
    %c0_1 = arith.constant 0 : index
    %0 = vector.load %arg1[%c0, %c0_0, %c0_1] : memref<4x9x2xf32, #tpu.memory_space<vmem>>, vector<4x9x2xf32>
    %c0_2 = arith.constant 0 : index
    %c0_3 = arith.constant 0 : index
    %c0_4 = arith.constant 0 : index
    %1 = vector.load %arg2[%c0_2, %c0_3, %c0_4] : memref<4x9x1xf32, #tpu.memory_space<vmem>>, vector<4x9x1xf32>
    %c0_5 = arith.constant 0 : index
    %c0_6 = arith.constant 0 : index
    %c0_7 = arith.constant 0 : index
    %2 = vector.load %arg3[%c0_5, %c0_6, %c0_7] : memref<4x9x1xf32, #tpu.memory_space<vmem>>, vector<4x9x1xf32>
    %cst = arith.constant dense<0.000000e+00> : vector<4x2xf32>
    %3 = vector.multi_reduction <add>, %0, %cst [1] : vector<4x9x2xf32> to vector<4x2xf32>
    %4 = vector.shape_cast %3 : vector<4x2xf32> to vector<4x1x2xf32>
    %cst_8 = arith.constant 9.000000e+00 : f32
    %5 = vector.broadcast %cst_8 : f32 to vector<4x1x2xf32>
    %6 = arith.divf %4, %5 : vector<4x1x2xf32>
    %7 = vector.broadcast %6 : vector<4x1x2xf32> to vector<4x9x2xf32>
    %8 = arith.subf %0, %7 : vector<4x9x2xf32>
    %9 = arith.mulf %8, %8 : vector<4x9x2xf32>
    %cst_9 = arith.constant dense<0.000000e+00> : vector<4x2xf32>
    %10 = vector.multi_reduction <add>, %9, %cst_9 [1] : vector<4x9x2xf32> to vector<4x2xf32>
    %11 = vector.shape_cast %10 : vector<4x2xf32> to vector<4x1x2xf32>
    %cst_10 = arith.constant 8.000000e+00 : f32
    %12 = vector.broadcast %cst_10 : f32 to vector<4x1x2xf32>
    %13 = arith.divf %11, %12 : vector<4x1x2xf32>
    %14 = math.sqrt %13 : vector<4x1x2xf32>
    %cst_11 = arith.constant 1.000000e-10 : f32
    %15 = vector.broadcast %cst_11 : f32 to vector<4x1x2xf32>
    %16 = arith.addf %14, %15 : vector<4x1x2xf32>
    %17 = tpu.reciprocal %16 : vector<4x1x2xf32> -> vector<4x1x2xf32>
    %18 = vector.broadcast %1 : vector<4x9x1xf32> to vector<4x9x2xf32>
    %19 = vector.broadcast %17 : vector<4x1x2xf32> to vector<4x9x2xf32>
    %20 = arith.mulf %18, %19 : vector<4x9x2xf32>
    %21 = arith.mulf %8, %20 : vector<4x9x2xf32>
    %22 = vector.broadcast %2 : vector<4x9x1xf32> to vector<4x9x2xf32>
    %23 = arith.addf %21, %22 : vector<4x9x2xf32>
    %c0_12 = arith.constant 0 : index
    %c0_13 = arith.constant 0 : index
    %c0_14 = arith.constant 0 : index
    %24 = vector.load %arg4[%c0_12, %c0_13, %c0_14] : memref<4x9x2xf32, #tpu.memory_space<vmem>>, vector<4x9x2xf32>
    tpu.vector_store %arg4[%c0_12, %c0_13, %c0_14], %23 {strides = array<i32>} : memref<4x9x2xf32, #tpu.memory_space<vmem>>, vector<4x9x2xf32>,
    return
  }
  func.func @transform_0(%arg0: i32) -> (i32, i32, i32) {
    %c0_i32 = arith.constant 0 : i32
    %c0_i32_0 = arith.constant 0 : i32
    %c0_i32_1 = arith.constant 0 : i32
    return %c0_i32, %c0_i32_0, %arg0 : i32, i32, i32
  }
  func.func @transform_1(%arg0: i32) -> (i32, i32, i32) {
    %c0_i32 = arith.constant 0 : i32
    %c0_i32_0 = arith.constant 0 : i32
    %c0_i32_1 = arith.constant 0 : i32
    %c0_i32_2 = arith.constant 0 : i32
    return %c0_i32, %c0_i32_0, %c0_i32_1 : i32, i32, i32
  }
  func.func @transform_2(%arg0: i32) -> (i32, i32, i32) {
    %c0_i32 = arith.constant 0 : i32
    %c0_i32_0 = arith.constant 0 : i32
    %c0_i32_1 = arith.constant 0 : i32
    %c0_i32_2 = arith.constant 0 : i32
    return %c0_i32, %c0_i32_0, %c0_i32_1 : i32, i32, i32
  }
  func.func @transform_3(%arg0: i32) -> (i32, i32, i32) {
    %c0_i32 = arith.constant 0 : i32
    %c0_i32_0 = arith.constant 0 : i32
    %c0_i32_1 = arith.constant 0 : i32
    return %c0_i32, %c0_i32_0, %arg0 : i32, i32, i32
  }
}

</mosaic_0001>

<bundles_post_ra>
// kernel: tpu_custom_call.1
= control target key start
LH: loop header
LB: loop body
LE: loop exit
PB: predicated region body
PF: predicated region fallthrough
CT: control target
= control target key end

     0   :  { %v309_v0 = vmov 0   ;;  %vm38_vm0 = vcmask 15360   ;;  %vm40_vm1 = vcmask 8192   ;;  %s514_s1 = inlined_call_operand.vmem [shape: f32[4,9,1], index: 1, kind: input, shape index: {}]   ;;  %s515_s0 = inlined_call_operand.vmem [shape: f32[4,9,2], index: 0, kind: input, shape index: {}]   ;;  %s516_s2 = inlined_call_operand.vmem [shape: f32[4,9,1], index: 2, kind: input, shape index: {}]   ;;  %s517_s3 = inlined_call_operand.vmem [shape: f32[4,9,2], index: 3, kind: output, shape index: {}]  }
   0x1   :  { %292 = vset.pattern.permute.xlu1 %v309_v0  ;;  %291 = vset.pattern.permute.xlu0 %v309_v0  ;;  %v24_v1 = vld [vmem:[%s514_s1 + $0x10] sm:$0xff]  ;;  %v22_v2 = vld [vmem:[%s514_s1] sm:$0xff]  ;;  %v25_v3 = vld [vmem:[%s514_s1 + $0x18] sm:$0x1] }
   0x2   :  { %186 = vperm.xlu1 %292, %v24_v1   ;;  %176 = vperm.xlu0 %291, %v22_v2   ;;  %v23_v4 = vld [vmem:[%s514_s1 + $0x8] sm:$0x1]  ;;  %v26_v6 = vld [vmem:[%s514_s1 + $0x20] sm:$0xff]  ;;  %v29_v9 = vld [vmem:[%s514_s1 + $0x38] sm:$0x1] }
   0x3   :  { %v27_v5 = vld [vmem:[%s514_s1 + $0x28] sm:$0x1]  ;;  %v351_v7 = vld [vmem:[%s515_s0] sm:$0xff]  ;;  %v28_v10 = vld [vmem:[%s514_s1 + $0x30] sm:$0xff] }
   0x4   :  { %v356_v8 = vld [vmem:[%s515_s0 + $0x8] sm:$0x1]  ;;  %v367_v11 = vld [vmem:[%s515_s0 + $0x10] sm:$0xff]  ;;  %v372_v12 = vld [vmem:[%s515_s0 + $0x18] sm:$0x1]  ;;  %v39_v13 = vsel %vm38_vm0, %v351_v7, 0.0 }
   0x5   :  { %v41_v14 = vsel %vm40_vm1, %v356_v8, 0.0  ;;  %v31_v15 = vld [vmem:[%s516_s2 + $0x8] sm:$0x1]  ;;  %v30_v16 = vld [vmem:[%s516_s2] sm:$0xff]  ;;  %v49_v17 = vsel %vm38_vm0, %v367_v11, 0.0  ;;  %v50_v18 = vsel %vm40_vm1, %v372_v12, 0.0 }
   0x6   :  { %191 = vperm.xlu1 %292, %v25_v3   ;;  %181 = vperm.xlu0 %291, %v23_v4   ;;  %v42_v19 = vadd.f32 %v41_v14, %v39_v13  ;;  %v391_v20 = vld [vmem:[%s515_s0 + $0x20] sm:$0xff]  ;;  %v396_v21 = vld [vmem:[%s515_s0 + $0x28] sm:$0x1]  ;;  %v51_v22 = vadd.f32 %v50_v18, %v49_v17  ;;  %v33_v23 = vld [vmem:[%s516_s2 + $0x18] sm:$0x1] }
   0x7   :  { %v32_v24 = vld [vmem:[%s516_s2 + $0x10] sm:$0xff]  ;;  %v58_v26 = vsel %vm38_vm0, %v391_v20, 0.0  ;;  %v59_v27 = vsel %vm40_vm1, %v396_v21, 0.0  ;;  %v21_v29 = vld [vmem:[%s515_s0 + $0x38] sm:$0x1]  ;;  %v34_v32 = vld [vmem:[%s516_s2 + $0x20] sm:$0xff] }
   0x8   :  { %v43_v25 = vrot.slane %v42_v19, 4  ;;  %v20_v28 = vld [vmem:[%s515_s0 + $0x30] sm:$0xff]  ;;  %v52_v30 = vrot.slane %v51_v22, 4  ;;  %v35_v31 = vld [vmem:[%s516_s2 + $0x28] sm:$0x1]  ;;  %v60_v34 = vadd.f32 %v59_v27, %v58_v26  ;;  %v68_v36 = vsel %vm40_vm1, %v21_v29, 0.0 }
   0x9   :  { %v67_v35 = vsel %vm38_vm0, %v20_v28, 0.0  ;;  %v37_v39 = vld [vmem:[%s516_s2 + $0x38] sm:$0x1]  ;;  %v36_v40 = vld [vmem:[%s516_s2 + $0x30] sm:$0xff] }
   0xa   :  { %201 = vperm.xlu1 %292, %v27_v5   ;;  %196 = vperm.xlu0 %291, %v26_v6   ;;  %v44_v33 = vadd.f32 %v43_v25, %v42_v19  ;;  %v53_v37 = vadd.f32 %v52_v30, %v51_v22  ;;  %v69_v38 = vadd.f32 %v68_v36, %v67_v35  ;;  %v61_v42 = vrot.slane %v60_v34, 4 }
   0xc   :  { %v45_v41 = vrot.slane %v44_v33, 2  ;;  %v54_v43 = vrot.slane %v53_v37, 2  ;;  %v70_v44 = vrot.slane %v69_v38, 4  ;;  %v62_v46 = vadd.f32 %v61_v42, %v60_v34 }
   0xe   :  { %211 = vperm.xlu1 %292, %v29_v9   ;;  %206 = vperm.xlu0 %291, %v28_v10   ;;  %v46_v45 = vadd.f32 %v45_v41, %v44_v33  ;;  %v55_v47 = vadd.f32 %v54_v43, %v53_v37  ;;  %v71_v48 = vadd.f32 %v70_v44, %v69_v38  ;;  %v63_v50 = vrot.slane %v62_v46, 2 }
  0x10   :  { %v47_v49 = vrot.slane %v46_v45, 1  ;;  %v56_v51 = vrot.slane %v55_v47, 1  ;;  %v72_v52 = vrot.slane %v71_v48, 2  ;;  %v64_v54 = vadd.f32 %v63_v50, %v62_v46 }
  0x12   :  { %237 = vperm.xlu1 %292, %v31_v15   ;;  %232 = vperm.xlu0 %291, %v30_v16   ;;  %v48_v53 = vadd.f32 %v47_v49, %v46_v45  ;;  %v57_v55 = vadd.f32 %v56_v51, %v55_v47  ;;  %v73_v56 = vadd.f32 %v72_v52, %v71_v48  ;;  %v65_v58 = vrot.slane %v64_v54, 1 }
  0x14   :  { %v77_v57 = vmul.f32 0.11111111, %v48_v53  ;;  %v78_v59 = vmul.f32 0.11111111, %v57_v55  ;;  %v74_v60 = vrot.slane %v73_v56, 1  ;;  %v66_v63 = vadd.f32 %v65_v58, %v64_v54 }
  0x16   :  { %247 = vperm.xlu1 %292, %v33_v23   ;;  %242 = vperm.xlu0 %291, %v32_v24   ;;  %v429_v61 = vsub.f32 %v351_v7, %v77_v57  ;;  %v432_v62 = vsub.f32 %v356_v8, %v77_v57  ;;  %v435_v0 = vsub.f32 %v367_v11, %v78_v59  ;;  %v79_v5 = vmul.f32 0.11111111, %v66_v63 }
  0x17   :  { %v438_v1 = vsub.f32 %v372_v12, %v78_v59  ;;  %v75_v2 = vadd.f32 %v74_v60, %v73_v56 }
  0x18   :  { %v89_v3 = vmul.f32 %v429_v61, %v429_v61  ;;  %v90_v4 = vmul.f32 %v432_v62, %v432_v62  ;;  %v91_v6 = vmul.f32 %v435_v0, %v435_v0  ;;  %v451_v11 = vsub.f32 %v391_v20, %v79_v5 }
  0x19   :  { %v92_v7 = vmul.f32 %v438_v1, %v438_v1  ;;  %v80_v8 = vmul.f32 0.11111111, %v75_v2  ;;  %v454_v12 = vsub.f32 %v396_v21, %v79_v5 }
  0x1a   :  { %257 = vperm.xlu1 %292, %v35_v31   ;;  %252 = vperm.xlu0 %291, %v34_v32   ;;  %v97_v9 = vsel %vm38_vm0, %v89_v3, 0.0  ;;  %v98_v10 = vsel %vm40_vm1, %v90_v4, 0.0  ;;  %v106_v13 = vsel %vm38_vm0, %v91_v6, 0.0  ;;  %v93_v17 = vmul.f32 %v451_v11, %v451_v11 }
  0x1b   :  { %v99_v14 = vadd.f32 %v98_v10, %v97_v9  ;;  %v457_v15 = vsub.f32 %v20_v28, %v80_v8  ;;  %v107_v16 = vsel %vm40_vm1, %v92_v7, 0.0  ;;  %v94_v18 = vmul.f32 %v454_v12, %v454_v12 }
  0x1c   :  { %v464_v19 = vsub.f32 %v21_v29, %v80_v8  ;;  %v108_v20 = vadd.f32 %v107_v16, %v106_v13  ;;  %v115_v21 = vsel %vm38_vm0, %v93_v17, 0.0 }
  0x1d   :  { %v100_v22 = vrot.slane %v99_v14, 4  ;;  %v116_v23 = vsel %vm40_vm1, %v94_v18, 0.0  ;;  %v95_v24 = vmul.f32 %v457_v15, %v457_v15 }
  0x1e   :  { %267 = vperm.xlu1 %292, %v37_v39   ;;  %262 = vperm.xlu0 %291, %v36_v40   ;;  %v96_v25 = vmul.f32 %v464_v19, %v464_v19  ;;  %v109_v26 = vrot.slane %v108_v20, 4  ;;  %v117_v28 = vadd.f32 %v116_v23, %v115_v21 }
  0x1f   :  { %v101_v27 = vadd.f32 %v100_v22, %v99_v14  ;;  %v124_v30 = vsel %vm38_vm0, %v95_v24, 0.0 }
  0x20   :  { %v125_v29 = vsel %vm40_vm1, %v96_v25, 0.0  ;;  %v110_v31 = vadd.f32 %v109_v26, %v108_v20  ;;  %v118_v33 = vrot.slane %v117_v28, 4 }
  0x21   :  { %v102_v32 = vrot.slane %v101_v27, 2  ;;  %v126_v34 = vadd.f32 %v125_v29, %v124_v30 }
  0x22   :  { %v111_v35 = vrot.slane %v110_v31, 2  ;;  %v119_v37 = vadd.f32 %v118_v33, %v117_v28 }
  0x23   :  { %v103_v36 = vadd.f32 %v102_v32, %v101_v27  ;;  %v127_v38 = vrot.slane %v126_v34, 4 }
  0x24   :  { %v112_v39 = vadd.f32 %v111_v35, %v110_v31  ;;  %v120_v41 = vrot.slane %v119_v37, 2 }
  0x25   :  { %v104_v40 = vrot.slane %v103_v36, 1  ;;  %v128_v42 = vadd.f32 %v127_v38, %v126_v34 }
  0x26   :  { %v113_v43 = vrot.slane %v112_v39, 1  ;;  %v121_v45 = vadd.f32 %v120_v41, %v119_v37 }
  0x27   :  { %v105_v44 = vadd.f32 %v104_v40, %v103_v36  ;;  %v129_v46 = vrot.slane %v128_v42, 2 }
  0x28   :  { %v114_v47 = vadd.f32 %v113_v43, %v112_v39  ;;  %v122_v49 = vrot.slane %v121_v45, 1 }
  0x29   :  { %v134_v48 = vmul.f32 0.125, %v105_v44  ;;  %v130_v50 = vadd.f32 %v129_v46, %v128_v42 }
  0x2a   :  { %v135_v51 = vmul.f32 0.125, %v114_v47  ;;  %v123_v52 = vadd.f32 %v122_v49, %v121_v45 }
  0x2b   :  { %293 = vrsqrt.f32 %v134_v48  ;;  %v131_v53 = vrot.slane %v130_v50, 1  ;;  %vm140_vm2 = vcmp.eq.f32.partialorder %v134_v48, inf  ;;  %v143_v60 = vand.u32 2147483648, %v134_v48 }
  0x2c   :  { %295 = vrsqrt.f32 %v135_v51  ;;  %v136_v54 = vmul.f32 0.125, %v123_v52  ;;  %vm142_vm3 = vcmp.eq.f32.partialorder %v134_v48, 0.0  ;;  %vm147_vm4 = vcmp.eq.f32.partialorder %v135_v51, inf }
  0x2d   :  { %v132_v55 = vadd.f32 %v131_v53, %v130_v50  ;;  %v150_v4 = vand.u32 2147483648, %v135_v51  ;;  %vm149_vm5 = vcmp.eq.f32.partialorder %v135_v51, 0.0 }
  0x2e   :  { %297 = vrsqrt.f32 %v136_v54  ;;  %vm154_vm6 = vcmp.eq.f32.partialorder %v136_v54, inf  ;;  %v157_v13 = vand.u32 2147483648, %v136_v54  ;;  %vm156_vm7 = vcmp.eq.f32.partialorder %v136_v54, 0.0 }
  0x2f   :  { %v137_v56 = vmul.f32 0.125, %v132_v55 }
  0x31   :  { %299 = vrsqrt.f32 %v137_v56  ;;  %vm161_vm8 = vcmp.eq.f32.partialorder %v137_v56, inf  ;;  %v164_v20 = vand.u32 2147483648, %v137_v56  ;;  %vm163_vm9 = vcmp.eq.f32.partialorder %v137_v56, 0.0 }
  0x38   :  { %v294_v57 = vpop.eup %293 }
  0x39   :  { %v139_v58 = vmul.f32 %v294_v57, %v134_v48  ;;  %v296_v59 = vpop.eup %295 }
  0x3a   :  { %v146_v63 = vmul.f32 %v296_v59, %v135_v51 }
  0x3b   :  { %v141_v2 = vsel %vm140_vm2, %v134_v48, %v139_v58  ;;  %v298_v3 = vpop.eup %297 }
  0x3c   :  { %v144_v5 = vsel %vm142_vm3, %v143_v60, %v141_v2  ;;  %v148_v6 = vsel %vm147_vm4, %v135_v51, %v146_v63  ;;  %v153_v7 = vmul.f32 %v298_v3, %v136_v54 }
  0x3d   :  { %v166_v9 = vadd.f32 1e-10, %v144_v5  ;;  %v151_v10 = vsel %vm149_vm5, %v150_v4, %v148_v6 }
  0x3e   :  { %v300_v8 = vpop.eup %299  ;;  %v155_v14 = vsel %vm154_vm6, %v136_v54, %v153_v7  ;;  %v167_v17 = vadd.f32 1e-10, %v151_v10 }
  0x3f   :  { %v160_v16 = vmul.f32 %v300_v8, %v137_v56  ;;  %301 = vrcp.f32 %v166_v9  ;;  %v158_v18 = vsel %vm156_vm7, %v157_v13, %v155_v14 }
  0x40   :  { %303 = vrcp.f32 %v167_v17  ;;  %v168_v21 = vadd.f32 1e-10, %v158_v18 }
  0x41   :  { %v162_v22 = vsel %vm161_vm8, %v137_v56, %v160_v16 }
  0x42   :  { %v165_v25 = vsel %vm163_vm9, %v164_v20, %v162_v22  ;;  %305 = vrcp.f32 %v168_v21 }
  0x43   :  { %v169_v26 = vadd.f32 1e-10, %v165_v25 }
  0x45   :  { %307 = vrcp.f32 %v169_v26 }
  0x4c   :  { %v302_v30 = vpop.eup %301 }
  0x4d   :  { %v304_v34 = vpop.eup %303 }
  0x4f   :  { %v306_v41 = vpop.eup %305 }
  0x52   :  { %v308_v48 = vpop.eup %307 }
  0x7d   :  { %v187_v23 = vpop.permute.xlu1 %186  ;;  %v177_v24 = vpop.permute.xlu0 %176 }
  0x7e   :  { %v214_v32 = vmul.f32 %v302_v30, %v177_v24  ;;  %v216_v37 = vmul.f32 %v304_v34, %v187_v23 }
  0x80   :  { %v222_v40 = vmul.f32 %v214_v32, %v429_v61  ;;  %v224_v61 = vmul.f32 %v216_v37, %v435_v0 }
  0x81   :  { %v192_v27 = vpop.permute.xlu1 %191  ;;  %v182_v28 = vpop.permute.xlu0 %181 }
  0x82   :  { %v215_v33 = vmul.f32 %v302_v30, %v182_v28  ;;  %v217_v38 = vmul.f32 %v304_v34, %v192_v27 }
  0x84   :  { %v223_v39 = vmul.f32 %v215_v33, %v432_v62  ;;  %v225_v62 = vmul.f32 %v217_v38, %v438_v1 }
  0x85   :  { %v202_v29 = vpop.permute.xlu1 %201  ;;  %v197_v31 = vpop.permute.xlu0 %196 }
  0x86   :  { %v219_v46 = vmul.f32 %v306_v41, %v202_v29  ;;  %v218_v47 = vmul.f32 %v306_v41, %v197_v31 }
  0x88   :  { %v227_v1 = vmul.f32 %v219_v46, %v454_v12  ;;  %v226_v0 = vmul.f32 %v218_v47, %v451_v11 }
  0x89   :  { %v212_v35 = vpop.permute.xlu1 %211  ;;  %v207_v36 = vpop.permute.xlu0 %206 }
  0x8a   :  { %v221_v53 = vmul.f32 %v308_v48, %v212_v35  ;;  %v220_v54 = vmul.f32 %v308_v48, %v207_v36 }
  0x8c   :  { %v229_v59 = vmul.f32 %v221_v53, %v464_v19  ;;  %v228_v12 = vmul.f32 %v220_v54, %v457_v15 }
  0x8d   :  { %v238_v42 = vpop.permute.xlu1 %237  ;;  %v233_v43 = vpop.permute.xlu0 %232 }
  0x8e   :  { %v271_v44 = vadd.f32 %v238_v42, %v223_v39  ;;  %v270_v45 = vadd.f32 %v233_v43, %v222_v40 }
  0x90   :  { %279 = vst.msk [vmem:[%s517_s3 + $0x8] sm:$0x1] %vm40_vm1, %v271_v44 }
  0x91   :  { %278 = vst.msk [vmem:[%s517_s3] sm:$0xff] %vm38_vm0, %v270_v45  ;;  %v248_v49 = vpop.permute.xlu1 %247  ;;  %v243_v50 = vpop.permute.xlu0 %242 }
  0x92   :  { %v273_v51 = vadd.f32 %v248_v49, %v225_v62  ;;  %v272_v52 = vadd.f32 %v243_v50, %v224_v61 }
  0x94   :  { %281 = vst.msk [vmem:[%s517_s3 + $0x18] sm:$0x1] %vm40_vm1, %v273_v51 }
  0x95   :  { %280 = vst.msk [vmem:[%s517_s3 + $0x10] sm:$0xff] %vm38_vm0, %v272_v52  ;;  %v258_v55 = vpop.permute.xlu1 %257  ;;  %v253_v56 = vpop.permute.xlu0 %252 }
  0x96   :  { %v275_v57 = vadd.f32 %v258_v55, %v227_v1  ;;  %v274_v58 = vadd.f32 %v253_v56, %v226_v0 }
  0x98   :  { %283 = vst.msk [vmem:[%s517_s3 + $0x28] sm:$0x1] %vm40_vm1, %v275_v57 }
  0x99   :  { %282 = vst.msk [vmem:[%s517_s3 + $0x20] sm:$0xff] %vm38_vm0, %v274_v58  ;;  %v268_v60 = vpop.permute.xlu1 %267  ;;  %v263_v11 = vpop.permute.xlu0 %262 }
  0x9a   :  { %v277_v63 = vadd.f32 %v268_v60, %v229_v59  ;;  %v276_v2 = vadd.f32 %v263_v11, %v228_v12 }
  0x9c   :  { %285 = vst.msk [vmem:[%s517_s3 + $0x38] sm:$0x1] %vm40_vm1, %v277_v63 }
  0x9d   :  { %284 = vst.msk [vmem:[%s517_s3 + $0x30] sm:$0xff] %vm38_vm0, %v276_v2 }

</bundles_post_ra>
